<compile_context>
chip_gen: v5e
topology: v5e:2x2
jax: 0.10.0
libtpu: 0.0.40
codegen_flags: <defaults>
</compile_context>

<pallas_src>
import functools

import jax
import jax.numpy as jnp
from jax import lax
from jax.experimental import pallas as pl
from jax.experimental.pallas import tpu as pltpu


VOCAB_TILE = 128   # lane width
ROW_TILE = 8       # sublane width
NEG_BIG = -1e30    # finite "minus infinity"


def _round_up(x, m):
    return (x + m - 1) // m * m


# ----------------------------------------------------------------------------
# Kernel 1: projection + online max / logsumexp / argmax over vocab tiles
# ----------------------------------------------------------------------------
def _proj_stats_kernel(x_ref, w_ref, b_ref,
                       logits_ref, lse_ref, top1_ref,
                       m_scr, l_scr, idx_scr):
    kv = pl.program_id(0)

    @pl.when(kv == 0)
    def _init():
        m_scr[...] = jnp.full(m_scr.shape, NEG_BIG, m_scr.dtype)
        l_scr[...] = jnp.zeros(l_scr.shape, l_scr.dtype)
        idx_scr[...] = jnp.zeros(idx_scr.shape, idx_scr.dtype)

    # bf16 x bf16 -> f32 accumulation on the MXU; weight already [In, Out].
    logits = jnp.dot(x_ref[...], w_ref[...],
                     preferred_element_type=jnp.float32) + b_ref[...]
    logits_ref[...] = logits                               # [N, 128] lane-dense store

    tv = logits.shape[-1]
    tile_max = jnp.max(logits, axis=-1, keepdims=True)     # [N, 1]
    lane = lax.broadcasted_iota(jnp.int32, logits.shape, 1)
    # first-occurrence argmax inside this vocab tile
    tile_arg = jnp.min(jnp.where(logits == tile_max, lane, tv),
                       axis=-1, keepdims=True)             # [N, 1] int32

    m_prev = m_scr[...]
    m_new = jnp.maximum(m_prev, tile_max)
    l_scr[...] = (l_scr[...] * jnp.exp(m_prev - m_new)
                  + jnp.sum(jnp.exp(logits - m_new), axis=-1, keepdims=True))
    # strictly-greater keeps the earliest tile on exact ties (torch.argmax semantics)
    idx_scr[...] = jnp.where(tile_max > m_prev, kv * tv + tile_arg, idx_scr[...])
    m_scr[...] = m_new

    @pl.when(kv == pl.num_programs(0) - 1)
    def _finalize():
        lse = m_scr[...] + jnp.log(l_scr[...])             # [N, 1]
        lse_ref[...] = jnp.broadcast_to(lse, lse_ref.shape)          # lane-dense
        top1_ref[...] = jnp.broadcast_to(idx_scr[...], top1_ref.shape)


# ----------------------------------------------------------------------------
# Kernel 2: logp = logits - lse, vocab tiles are independent ("parallel")
# ----------------------------------------------------------------------------
def _logp_kernel(logits_ref, lse_ref, logp_ref):
    # lse_ref holds the row-wise logsumexp broadcast across all 128 lanes, and the
    # logits tile is exactly 128 lanes wide, so this is a plain elementwise subtract.
    logp_ref[...] = logits_ref[...] - lse_ref[...]


# ----------------------------------------------------------------------------
# Host-side wrappers
# ----------------------------------------------------------------------------
def prep_generator_params(proj_weight, proj_bias):
    """proj_weight: [V, H] (PyTorch nn.Linear layout), proj_bias: [V]."""
    V, H = proj_weight.shape
    V_pad = _round_up(V, VOCAB_TILE)
    # pre-transpose to [In, Out] and pad vocab to a lane multiple
    w = jnp.zeros((H, V_pad), jnp.float32).at[:, :V].set(proj_weight.T)
    b = jnp.full((1, V_pad), NEG_BIG, jnp.float32).at[0, :V].set(proj_bias)
    return {"w": w.astype(jnp.bfloat16), "b": b}


def generator_forward(params, pre_outputs, *, tgt_vocab_size):
    lead = pre_outputs.shape[:-1]
    H = pre_outputs.shape[-1]
    V = tgt_vocab_size

    # fold all leading dims (batch, seq, ...) onto the sublane axis
    x = pre_outputs.reshape(-1, H)
    N = x.shape[0]
    N_pad = _round_up(max(N, 1), ROW_TILE)
    if N_pad != N:
        x = jnp.pad(x, ((0, N_pad - N), (0, 0)))
    x = x.astype(jnp.bfloat16)

    w, b = params["w"], params["b"]
    V_pad = w.shape[1]
    n_vtiles = V_pad // VOCAB_TILE

    logits, lse, top1 = pl.pallas_call(
        _proj_stats_kernel,
        out_shape=(jax.ShapeDtypeStruct((N_pad, V_pad), jnp.float32),
                   jax.ShapeDtypeStruct((N_pad, VOCAB_TILE), jnp.float32),
                   jax.ShapeDtypeStruct((N_pad, VOCAB_TILE), jnp.int32)),
        grid_spec=pltpu.PrefetchScalarGridSpec(
            num_scalar_prefetch=0,
            grid=(n_vtiles,),
            in_specs=[
                pl.BlockSpec((N_pad, H), lambda kv: (0, 0)),          # resident x
                pl.BlockSpec((H, VOCAB_TILE), lambda kv: (0, kv)),    # streamed W slab
                pl.BlockSpec((1, VOCAB_TILE), lambda kv: (0, kv)),    # streamed bias
            ],
            out_specs=(
                pl.BlockSpec((N_pad, VOCAB_TILE), lambda kv: (0, kv)),  # logits tiles
                pl.BlockSpec((N_pad, VOCAB_TILE), lambda kv: (0, 0)),   # lse (resident)
                pl.BlockSpec((N_pad, VOCAB_TILE), lambda kv: (0, 0)),   # top1 (resident)
            ),
            scratch_shapes=[pltpu.VMEM((N_pad, 1), jnp.float32),   # running max
                            pltpu.VMEM((N_pad, 1), jnp.float32),   # running sum-exp
                            pltpu.VMEM((N_pad, 1), jnp.int32)]),   # running argmax
        compiler_params=pltpu.CompilerParams(
            dimension_semantics=("arbitrary",)),
    )(x, w, b)

    logp = pl.pallas_call(
        _logp_kernel,
        out_shape=jax.ShapeDtypeStruct((N_pad, V_pad), jnp.float32),
        grid_spec=pltpu.PrefetchScalarGridSpec(
            num_scalar_prefetch=0,
            grid=(n_vtiles,),
            in_specs=[
                pl.BlockSpec((N_pad, VOCAB_TILE), lambda kv: (0, kv)),
                pl.BlockSpec((N_pad, VOCAB_TILE), lambda kv: (0, 0)),
            ],
            out_specs=pl.BlockSpec((N_pad, VOCAB_TILE), lambda kv: (0, kv))),
        compiler_params=pltpu.CompilerParams(
            dimension_semantics=("parallel",)),
    )(logits, lse)

    probs = logp[:N, :V].reshape(tuple(lead) + (V,))
    top1_out = top1[:N, 0].reshape(tuple(lead))
    return probs, top1_out


# ----------------------------------------------------------------------------
# Main
# ----------------------------------------------------------------------------
if __name__ == "__main__":
    B, S, H, V = 2, 8, 32, 40          # batch, seq, rnn_hidden_size, tgt_vocab_size

    key = jax.random.PRNGKey(0)
    kw, kb, kx = jax.random.split(key, 3)
    # TODO(synk): PyTorch nn.Linear uses kaiming-uniform init; small normal used here
    # (initialization only — forward semantics are unchanged).
    proj_weight = (0.1 * jax.random.normal(kw, (V, H))).astype(jnp.float32)  # [out, in]
    proj_bias = (0.1 * jax.random.normal(kb, (V,))).astype(jnp.float32)
    pre_outputs = jax.random.normal(kx, (B, S, H), jnp.float32)

    params = prep_generator_params(proj_weight, proj_bias)
    fwd = jax.jit(functools.partial(generator_forward, tgt_vocab_size=V))

    probs, top1 = fwd(params, pre_outputs)
    probs, top1 = jax.block_until_ready((probs, top1))

    # Pure-JAX reference with the same bf16 operand rounding as the MXU path.
    x32 = pre_outputs.astype(jnp.bfloat16).astype(jnp.float32)
    w32 = proj_weight.astype(jnp.bfloat16).astype(jnp.float32)
    ref_logits = jnp.einsum("bsh,vh->bsv", x32, w32) + proj_bias
    ref_probs = jax.nn.log_softmax(ref_logits, axis=-1)
    ref_top1 = jnp.argmax(ref_probs, axis=-1)

    assert probs.shape == (B, S, V) and top1.shape == (B, S)
    assert bool(jnp.all(jnp.isfinite(probs)))
    assert bool(jnp.allclose(probs, ref_probs, atol=2e-3, rtol=2e-3))
    assert bool(jnp.all(top1 == ref_top1))
    print("KERNEL_OK")
</pallas_src>

<mosaic_0001>
module attributes {stable_mosaic.version = 11 : i64} {
  func.func @_logp_kernel(%arg0: i32, %arg1: memref<16x128xf32, #tpu.memory_space<vmem>>, %arg2: memref<16x128xf32, #tpu.memory_space<vmem>>, %arg3: memref<16x128xf32, #tpu.memory_space<vmem>>) attributes {dimension_semantics = [#tpu.dimension_semantics<parallel>], iteration_bounds = array<i64: 1>, scalar_prefetch = 0 : i64, scratch_operands = 0 : i64, tpu.core_type = #tpu.core_type<tc>, window_params = [{transform_indices = @transform_0, window_bounds = array<i64: 16, 128>}, {pipeline_mode = #tpu.pipeline_mode<synchronous>, transform_indices = @transform_1, window_bounds = array<i64: 16, 128>}, {transform_indices = @transform_2, window_bounds = array<i64: 16, 128>}]} {
    %c0 = arith.constant 0 : index
    %c0_0 = arith.constant 0 : index
    %0 = vector.load %arg1[%c0, %c0_0] : memref<16x128xf32, #tpu.memory_space<vmem>>, vector<16x128xf32>
    %c0_1 = arith.constant 0 : index
    %c0_2 = arith.constant 0 : index
    %1 = vector.load %arg2[%c0_1, %c0_2] : memref<16x128xf32, #tpu.memory_space<vmem>>, vector<16x128xf32>
    %2 = arith.subf %0, %1 : vector<16x128xf32>
    %c0_3 = arith.constant 0 : index
    %c0_4 = arith.constant 0 : index
    %3 = vector.load %arg3[%c0_3, %c0_4] : memref<16x128xf32, #tpu.memory_space<vmem>>, vector<16x128xf32>
    tpu.vector_store %arg3[%c0_3, %c0_4], %2 {strides = array<i32>} : memref<16x128xf32, #tpu.memory_space<vmem>>, vector<16x128xf32>,
    return
  }
  func.func @transform_0(%arg0: i32) -> (i32, i32) {
    %c0_i32 = arith.constant 0 : i32
    %c0_i32_0 = arith.constant 0 : i32
    return %c0_i32, %arg0 : i32, i32
  }
  func.func @transform_1(%arg0: i32) -> (i32, i32) {
    %c0_i32 = arith.constant 0 : i32
    %c0_i32_0 = arith.constant 0 : i32
    %c0_i32_1 = arith.constant 0 : i32
    return %c0_i32, %c0_i32_0 : i32, i32
  }
  func.func @transform_2(%arg0: i32) -> (i32, i32) {
    %c0_i32 = arith.constant 0 : i32
    %c0_i32_0 = arith.constant 0 : i32
    return %c0_i32, %arg0 : i32, i32
  }
}

module attributes {stable_mosaic.version = 11 : i64} {
  func.func @_proj_stats_kernel(%arg0: i32, %arg1: memref<16x32xbf16, #tpu.memory_space<vmem>>, %arg2: memref<32x128xbf16, #tpu.memory_space<vmem>>, %arg3: memref<1x128xf32, #tpu.memory_space<vmem>>, %arg4: memref<16x128xf32, #tpu.memory_space<vmem>>, %arg5: memref<16x128xf32, #tpu.memory_space<vmem>>, %arg6: memref<16x128xi32, #tpu.memory_space<vmem>>, %arg7: memref<16x1xf32, #tpu.memory_space<vmem>>, %arg8: memref<16x1xf32, #tpu.memory_space<vmem>>, %arg9: memref<16x1xi32, #tpu.memory_space<vmem>>) attributes {dimension_semantics = [#tpu.dimension_semantics<arbitrary>], iteration_bounds = array<i64: 1>, scalar_prefetch = 0 : i64, scratch_operands = 3 : i64, tpu.core_type = #tpu.core_type<tc>, window_params = [{pipeline_mode = #tpu.pipeline_mode<synchronous>, transform_indices = @transform_0, window_bounds = array<i64: 16, 32>}, {transform_indices = @transform_1, window_bounds = array<i64: 32, 128>}, {transform_indices = @transform_2, window_bounds = array<i64: 1, 128>}, {transform_indices = @transform_3, window_bounds = array<i64: 16, 128>}, {pipeline_mode = #tpu.pipeline_mode<synchronous>, transform_indices = @transform_4, window_bounds = array<i64: 16, 128>}, {pipeline_mode = #tpu.pipeline_mode<synchronous>, transform_indices = @transform_5, window_bounds = array<i64: 16, 128>}]} {
    %c0_i32 = arith.constant 0 : i32
    %0 = arith.cmpi eq, %arg0, %c0_i32 : i32
    %1 = arith.extui %0 : i1 to i32
    %c0_i32_0 = arith.constant 0 : i32
    %2 = arith.cmpi ne, %1, %c0_i32_0 : i32
    scf.if %2 {
      %cst_26 = arith.constant -1.000000e+30 : f32
      %43 = vector.broadcast %cst_26 : f32 to vector<16x1xf32>
      %c0_27 = arith.constant 0 : index
      %c0_28 = arith.constant 0 : index
      %44 = vector.load %arg7[%c0_27, %c0_28] : memref<16x1xf32, #tpu.memory_space<vmem>>, vector<16x1xf32>
      tpu.vector_store %arg7[%c0_27, %c0_28], %43 {strides = array<i32>} : memref<16x1xf32, #tpu.memory_space<vmem>>, vector<16x1xf32>,
      %cst_29 = arith.constant 0.000000e+00 : f32
      %45 = vector.broadcast %cst_29 : f32 to vector<16x1xf32>
      %c0_30 = arith.constant 0 : index
      %c0_31 = arith.constant 0 : index
      %46 = vector.load %arg8[%c0_30, %c0_31] : memref<16x1xf32, #tpu.memory_space<vmem>>, vector<16x1xf32>
      tpu.vector_store %arg8[%c0_30, %c0_31], %45 {strides = array<i32>} : memref<16x1xf32, #tpu.memory_space<vmem>>, vector<16x1xf32>,
      %c0_i32_32 = arith.constant 0 : i32
      %47 = vector.broadcast %c0_i32_32 : i32 to vector<16x1xi32>
      %c0_33 = arith.constant 0 : index
      %c0_34 = arith.constant 0 : index
      %48 = vector.load %arg9[%c0_33, %c0_34] : memref<16x1xi32, #tpu.memory_space<vmem>>, vector<16x1xi32>
      tpu.vector_store %arg9[%c0_33, %c0_34], %47 {strides = array<i32>} : memref<16x1xi32, #tpu.memory_space<vmem>>, vector<16x1xi32>,
    } else {
    }
    %c0 = arith.constant 0 : index
    %c0_1 = arith.constant 0 : index
    %3 = vector.load %arg1[%c0, %c0_1] : memref<16x32xbf16, #tpu.memory_space<vmem>>, vector<16x32xbf16>
    %c0_2 = arith.constant 0 : index
    %c0_3 = arith.constant 0 : index
    %4 = vector.load %arg2[%c0_2, %c0_3] : memref<32x128xbf16, #tpu.memory_space<vmem>>, vector<32x128xbf16>
    %cst = arith.constant dense<0.000000e+00> : vector<16x128xf32>
    %5 = tpu.matmul %3, %4, %cst {dimension_numbers = #tpu.dot_dimension_numbers<[1], [0], [0], [1], [0, 0, 1, 1], [], []>} : vector<16x32xbf16>, vector<32x128xbf16>, vector<16x128xf32> -> vector<16x128xf32>
    %c0_4 = arith.constant 0 : index
    %c0_5 = arith.constant 0 : index
    %6 = vector.load %arg3[%c0_4, %c0_5] : memref<1x128xf32, #tpu.memory_space<vmem>>, vector<1x128xf32>
    %7 = vector.broadcast %6 : vector<1x128xf32> to vector<16x128xf32>
    %8 = arith.addf %5, %7 : vector<16x128xf32>
    %c0_6 = arith.constant 0 : index
    %c0_7 = arith.constant 0 : index
    %9 = vector.load %arg4[%c0_6, %c0_7] : memref<16x128xf32, #tpu.memory_space<vmem>>, vector<16x128xf32>
    tpu.vector_store %arg4[%c0_6, %c0_7], %8 {strides = array<i32>} : memref<16x128xf32, #tpu.memory_space<vmem>>, vector<16x128xf32>,
    %cst_8 = arith.constant dense<0xFF800000> : vector<16xf32>
    %10 = vector.multi_reduction <maximumf>, %8, %cst_8 [1] : vector<16x128xf32> to vector<16xf32>
    %11 = vector.shape_cast %10 : vector<16xf32> to vector<16x1xf32>
    %12 = tpu.iota {dimensions = array<i32: 1>} : vector<16x128xi32>
    %13 = vector.broadcast %11 : vector<16x1xf32> to vector<16x128xf32>
    %14 = arith.cmpf oeq, %8, %13 : vector<16x128xf32>
    %c128_i32 = arith.constant 128 : i32
    %15 = vector.broadcast %c128_i32 : i32 to vector<16x128xi32>
    %16 = arith.select %14, %12, %15 : vector<16x128xi1>, vector<16x128xi32>
    %cst_9 = arith.constant dense<2147483647> : vector<16xi32>
    %17 = vector.multi_reduction <minsi>, %16, %cst_9 [1] : vector<16x128xi32> to vector<16xi32>
    %18 = vector.shape_cast %17 : vector<16xi32> to vector<16x1xi32>
    %c0_10 = arith.constant 0 : index
    %c0_11 = arith.constant 0 : index
    %19 = vector.load %arg7[%c0_10, %c0_11] : memref<16x1xf32, #tpu.memory_space<vmem>>, vector<16x1xf32>
    %20 = arith.maximumf %19, %11 : vector<16x1xf32>
    %c0_12 = arith.constant 0 : index
    %c0_13 = arith.constant 0 : index
    %21 = vector.load %arg8[%c0_12, %c0_13] : memref<16x1xf32, #tpu.memory_space<vmem>>, vector<16x1xf32>
    %22 = arith.subf %19, %20 : vector<16x1xf32>
    %23 = math.exp %22 : vector<16x1xf32>
    %24 = arith.mulf %21, %23 : vector<16x1xf32>
    %25 = vector.broadcast %20 : vector<16x1xf32> to vector<16x128xf32>
    %26 = arith.subf %8, %25 : vector<16x128xf32>
    %27 = math.exp %26 : vector<16x128xf32>
    %cst_14 = arith.constant dense<0.000000e+00> : vector<16xf32>
    %28 = vector.multi_reduction <add>, %27, %cst_14 [1] : vector<16x128xf32> to vector<16xf32>
    %29 = vector.shape_cast %28 : vector<16xf32> to vector<16x1xf32>
    %30 = arith.addf %24, %29 : vector<16x1xf32>
    %c0_15 = arith.constant 0 : index
    %c0_16 = arith.constant 0 : index
    %31 = vector.load %arg8[%c0_15, %c0_16] : memref<16x1xf32, #tpu.memory_space<vmem>>, vector<16x1xf32>
    tpu.vector_store %arg8[%c0_15, %c0_16], %30 {strides = array<i32>} : memref<16x1xf32, #tpu.memory_space<vmem>>, vector<16x1xf32>,
    %32 = arith.cmpf ogt, %11, %19 : vector<16x1xf32>
    %c128_i32_17 = arith.constant 128 : i32
    %33 = arith.muli %arg0, %c128_i32_17 : i32
    %34 = vector.broadcast %33 : i32 to vector<16x1xi32>
    %35 = arith.addi %34, %18 : vector<16x1xi32>
    %c0_18 = arith.constant 0 : index
    %c0_19 = arith.constant 0 : index
    %36 = vector.load %arg9[%c0_18, %c0_19] : memref<16x1xi32, #tpu.memory_space<vmem>>, vector<16x1xi32>
    %37 = arith.select %32, %35, %36 : vector<16x1xi1>, vector<16x1xi32>
    %c0_20 = arith.constant 0 : index
    %c0_21 = arith.constant 0 : index
    %38 = vector.load %arg9[%c0_20, %c0_21] : memref<16x1xi32, #tpu.memory_space<vmem>>, vector<16x1xi32>
    tpu.vector_store %arg9[%c0_20, %c0_21], %37 {strides = array<i32>} : memref<16x1xi32, #tpu.memory_space<vmem>>, vector<16x1xi32>,
    %c0_22 = arith.constant 0 : index
    %c0_23 = arith.constant 0 : index
    %39 = vector.load %arg7[%c0_22, %c0_23] : memref<16x1xf32, #tpu.memory_space<vmem>>, vector<16x1xf32>
    tpu.vector_store %arg7[%c0_22, %c0_23], %20 {strides = array<i32>} : memref<16x1xf32, #tpu.memory_space<vmem>>, vector<16x1xf32>,
    %c0_i32_24 = arith.constant 0 : i32
    %40 = arith.cmpi eq, %arg0, %c0_i32_24 : i32
    %41 = arith.extui %40 : i1 to i32
    %c0_i32_25 = arith.constant 0 : i32
    %42 = arith.cmpi ne, %41, %c0_i32_25 : i32
    scf.if %42 {
      %c0_26 = arith.constant 0 : index
      %c0_27 = arith.constant 0 : index
      %43 = vector.load %arg7[%c0_26, %c0_27] : memref<16x1xf32, #tpu.memory_space<vmem>>, vector<16x1xf32>
      %c0_28 = arith.constant 0 : index
      %c0_29 = arith.constant 0 : index
      %44 = vector.load %arg8[%c0_28, %c0_29] : memref<16x1xf32, #tpu.memory_space<vmem>>, vector<16x1xf32>
      %45 = math.log %44 : vector<16x1xf32>
      %46 = arith.addf %43, %45 : vector<16x1xf32>
      %47 = vector.shape_cast %46 : vector<16x1xf32> to vector<16x1xf32>
      %48 = vector.broadcast %47 : vector<16x1xf32> to vector<16x128xf32>
      %c0_30 = arith.constant 0 : index
      %c0_31 = arith.constant 0 : index
      %49 = vector.load %arg5[%c0_30, %c0_31] : memref<16x128xf32, #tpu.memory_space<vmem>>, vector<16x128xf32>
      tpu.vector_store %arg5[%c0_30, %c0_31], %48 {strides = array<i32>} : memref<16x128xf32, #tpu.memory_space<vmem>>, vector<16x128xf32>,
      %c0_32 = arith.constant 0 : index
      %c0_33 = arith.constant 0 : index
      %50 = vector.load %arg9[%c0_32, %c0_33] : memref<16x1xi32, #tpu.memory_space<vmem>>, vector<16x1xi32>
      %51 = vector.shape_cast %50 : vector<16x1xi32> to vector<16x1xi32>
      %52 = vector.broadcast %51 : vector<16x1xi32> to vector<16x128xi32>
      %c0_34 = arith.constant 0 : index
      %c0_35 = arith.constant 0 : index
      %53 = vector.load %arg6[%c0_34, %c0_35] : memref<16x128xi32, #tpu.memory_space<vmem>>, vector<16x128xi32>
      tpu.vector_store %arg6[%c0_34, %c0_35], %52 {strides = array<i32>} : memref<16x128xi32, #tpu.memory_space<vmem>>, vector<16x128xi32>,
    } else {
    }
    return
  }
  func.func @transform_0(%arg0: i32) -> (i32, i32) {
    %c0_i32 = arith.constant 0 : i32
    %c0_i32_0 = arith.constant 0 : i32
    %c0_i32_1 = arith.constant 0 : i32
    return %c0_i32, %c0_i32_0 : i32, i32
  }
  func.func @transform_1(%arg0: i32) -> (i32, i32) {
    %c0_i32 = arith.constant 0 : i32
    %c0_i32_0 = arith.constant 0 : i32
    return %c0_i32, %arg0 : i32, i32
  }
  func.func @transform_2(%arg0: i32) -> (i32, i32) {
    %c0_i32 = arith.constant 0 : i32
    %c0_i32_0 = arith.constant 0 : i32
    return %c0_i32, %arg0 : i32, i32
  }
  func.func @transform_3(%arg0: i32) -> (i32, i32) {
    %c0_i32 = arith.constant 0 : i32
    %c0_i32_0 = arith.constant 0 : i32
    return %c0_i32, %arg0 : i32, i32
  }
  func.func @transform_4(%arg0: i32) -> (i32, i32) {
    %c0_i32 = arith.constant 0 : i32
    %c0_i32_0 = arith.constant 0 : i32
    %c0_i32_1 = arith.constant 0 : i32
    return %c0_i32, %c0_i32_0 : i32, i32
  }
  func.func @transform_5(%arg0: i32) -> (i32, i32) {
    %c0_i32 = arith.constant 0 : i32
    %c0_i32_0 = arith.constant 0 : i32
    %c0_i32_1 = arith.constant 0 : i32
    return %c0_i32, %c0_i32_0 : i32, i32
  }
}

</mosaic_0001>

<bundles_post_ra>
// kernel: squeeze.1
= control target key start
LH: loop header
LB: loop body
LE: loop exit
PB: predicated region body
PF: predicated region fallthrough
CT: control target
= control target key end

     0   :  { %s80_s0 = inlined_call_operand.vmem [shape: s32[16], index: 0, kind: input, shape index: {}]   ;;  %s81_s1 = inlined_call_operand.hbm [shape: s32[2,8], index: 1, kind: output, shape index: {}]  }
   0x1   :  { %v5_v0 = vld [vmem:[%s80_s0] sm:$0x1] }
   0x2   :  { %2 = vsyncpa [#allocation1], 0  ;;  %6 = vst [vmem:[#allocation3] sm:$0x1] %v5_v0  ;;  %vm8_vm0 = vcmask 64512   ;;  %s62_s0 = smov 120  }
   0x3   :  { %s63_s8 = smov [#allocation0]   ;;  %s27_s1 = sshll.u32 %s81_s1, 4  ;;  %s28_s1 = int_to_ptr.hbm [resolvable:$true] %s27_s1 }
   0x4   :  { %s25_s9 = sshll.u32 %s63_s8, 4  ;;  %s26_s9 = int_to_ptr.vmem [resolvable:$true] %s25_s9 }
   0x9   :  { %v10_v1 = vld [vmem:[#allocation3] sm:$0x1]  }
   0xa   :  { %v7_v2 = vld [vmem:[#allocation3] sm:$0x1]   ;;  %11 = vrot.lane.b32.xlu0 %v10_v1, %s62_s0 }
   0xb   :  { %9 = vst.msk [vmem:[#allocation2] sm:$0x1] %vm8_vm0, %v7_v2  }
  0x7c   :  { %v12_v3 = vpop.permute.xlu0 %11  }
  0x7d   :  { %15 = vst.msk [vmem:[#allocation2 + $0x1] sm:$0x1] %vm8_vm0, %v12_v3  }
  0x84   :  { %v18_v4 = vld [vmem:[#allocation2] sm:$0x3] }
  0x85   :  { %21 = vst [vmem:[#allocation0] sm:$0x3] %v18_v4 }
  0x86   :  { %30 = dma.vmem_to_hbm [thread:$0]  %s26_s9, 32, %s28_s1, [#allocation1]  }
  0x87   :  { %60 = dma.done.wait [#allocation1], 32  }
  0x88   :  { %61 = vsyncadd [#allocation1], 4294967264 }
  0x89   :  { %33 = vsyncpa [#allocation1], 1 }

// kernel: generator_forward.3
= control target key start
LH: loop header
LB: loop body
LE: loop exit
PB: predicated region body
PF: predicated region fallthrough
CT: control target
= control target key end

     0   :  { %s56_s0 = inlined_call_operand.vmem [shape: f32[16,128], index: 0, kind: input, shape index: {}]   ;;  %s57_s1 = inlined_call_operand.vmem [shape: f32[16,128], index: 1, kind: input, shape index: {}]   ;;  %s58_s2 = inlined_call_operand.vmem [shape: f32[16,128], index: 2, kind: output, shape index: {}]  }
   0x1   :  { %v11_v0 = vld [vmem:[%s56_s0] sm:$0xff]  ;;  %v12_v2 = vld [vmem:[%s56_s0 + $0x8] sm:$0xff] }
   0x2   :  { %v13_v1 = vld [vmem:[%s57_s1] sm:$0xff]  ;;  %v14_v4 = vld [vmem:[%s57_s1 + $0x8] sm:$0xff] }
   0x3   :  { %v15_v3 = vsub.f32 %v11_v0, %v13_v1  ;;  %v16_v5 = vsub.f32 %v12_v2, %v14_v4 }
   0x5   :  { %17 = vst [vmem:[%s58_s2] sm:$0xff] %v15_v3 }
   0x6   :  { %18 = vst [vmem:[%s58_s2 + $0x8] sm:$0xff] %v16_v5 }

// kernel: generator_forward.2
= control target key start
LH: loop header
LB: loop body
LE: loop exit
PB: predicated region body
PF: predicated region fallthrough
CT: control target
= control target key end

     0   :  { %vm56_vm0 = vcmask 261120   ;;  %vm22_vm1 = vcmask 7168   ;;  %v249_v3 = vmov -1e+30   ;;  %v250_v9 = vmov 0   ;;  %s341_s1 = inlined_call_operand.vmem [shape: bf16[32,128], index: 1, kind: input, shape index: {}]   ;;  %s342_s2 = inlined_call_operand.vmem [shape: f32[1,128], index: 2, kind: input, shape index: {}]   ;;  %s343_s0 = inlined_call_operand.vmem [shape: bf16[16,32], index: 0, kind: input, shape index: {}]   ;;  %s344_s3 = inlined_call_operand.vmem [shape: f32[16,128], index: 3, kind: output, shape index: {0}]   ;;  %s345_s4 = inlined_call_operand.vmem [shape: f32[16,128], index: 4, kind: output, shape index: {1}]   ;;  %s346_s5 = inlined_call_operand.vmem [shape: s32[16,128], index: 5, kind: output, shape index: {2}]  }
   0x1   :  { %v229_v0 = vld [vmem:[%s341_s1 + $0x8] sm:$0xff]  ;;  %v228_v1 = vld [vmem:[%s341_s1] sm:$0xff]  ;;  %23 = vst.msk [vmem:[#allocation2] sm:$0xff] %vm22_vm1, %v249_v3  ;;  %233 = vset.pattern.permute.xlu1 %v250_v9  ;;  %234 = vset.pattern.permute.xlu2 %v250_v9  ;;  %v251_v10 = vmov 0.0   ;;  %v80_v11 = vlaneseq }
   0x2   :  { %66 = vmatpush.bf16.msra.mxu0 %v229_v0  ;;  %v227_v2 = vld [vmem:[%s343_s0] sm:$0xff]  ;;  %24 = vst.msk [vmem:[#allocation2 + $0x8] sm:$0xff] %vm22_vm1, %v249_v3  ;;  %235 = vset.pattern.permute.xlu0 %v250_v9 }
   0x3   :  { %v236_v4 = vld [vmem:[%s342_s2] ss:$0 sm:$0xff]  ;;  %27 = vst.msk [vmem:[#allocation4] sm:$0xff] %vm22_vm1, %v250_v9  ;;  %v81_v13 = vand.u32 127, %v80_v11 }
   0x4   :  { %28 = vst.msk [vmem:[#allocation4 + $0x8] sm:$0xff] %vm22_vm1, %v250_v9 }
   0x5   :  { %25 = vst.msk [vmem:[#allocation3] sm:$0xff] %vm22_vm1, %v251_v10 }
   0x6   :  { %67 = vmatpush.bf16.msra.mxu0 %v228_v1  ;;  %26 = vst.msk [vmem:[#allocation3 + $0x8] sm:$0xff] %vm22_vm1, %v251_v10 }
   0x8   :  { %v306_v12 = vld [vmem:[#allocation2] sm:$0xff] }
   0x9   :  { %226 = vmatmul.msk.bf16.vlgmr.msra.gmra.mxu0 %vm56_vm0, %v227_v2  ;;  %v312_v20 = vld [vmem:[#allocation2 + $0x8] sm:$0xff] }
   0xa   :  { %v159_v51 = vld [vmem:[#allocation4] sm:$0xff] }
   0xb   :  { %v160_v2 = vld [vmem:[#allocation4 + $0x8] sm:$0xff] }
   0xc   :  { %v118_v48 = vld [vmem:[#allocation3] sm:$0xff] }
   0xd   :  { %v119_v58 = vld [vmem:[#allocation3 + $0x8] sm:$0xff] }
  0x86   :  { %v69_v5 = vpop.f32.mrf.mxu0 }
  0x87   :  { %v70_v6 = vadd.f32 %v236_v4, %v69_v5 }
  0x89   :  { %74 = vst [vmem:[%s344_s3] sm:$0xff] %v70_v6  ;;  %76 = vmax.xlane.f32.xlu0 %v70_v6 }
  0x8e   :  { %v71_v7 = vpop.f32.mrf.mxu0 }
  0x8f   :  { %v72_v8 = vadd.f32 %v236_v4, %v71_v7 }
  0x91   :  { %75 = vst [vmem:[%s344_s3 + $0x8] sm:$0xff] %v72_v8  ;;  %78 = vmax.xlane.f32.xlu0 %v72_v8 }
  0xfc   :  { %v77_v14 = vpop.xlane.xlu0 %76 }
  0xfd   :  { %vm82_vm2 = vcmp.eq.f32.partialorder %v70_v6, %v77_v14  ;;  %v116_v15 = vmax.f32 %v306_v12, %v77_v14  ;;  %vm153_vm3 = vcmp.gt.f32.partialorder %v77_v14, %v306_v12 }
  0xfe   :  { %v84_v16 = vsel %vm82_vm2, %v81_v13, 128 }
  0xff   :  { %v120_v17 = vsub.f32 %v306_v12, %v116_v15  ;;  %165 = vst.msk [vmem:[#allocation2] sm:$0xff] %vm22_vm1, %v116_v15  ;;  %130 = vperm.xlu1 %233, %v116_v15   ;;  %v87_v18 = vshra.s32 %v84_v16, 16  ;;  %v86_v29 = vand.u32 65535, %v84_v16 }
 0x101   :  { %v89_v19 = vcvt.s32.f32 %v87_v18  ;;  %v88_v32 = vcvt.s32.f32 %v86_v29  ;;  %v122_v43 = vmul.f32 1.442695, %v120_v17 }
 0x103   :  { %90 = vmin.xlane.f32.xlu2 %v89_v19 }
 0x104   :  { %v314_v21 = vpop.xlane.xlu0 %78 }
 0x105   :  { %vm83_vm4 = vcmp.eq.f32.partialorder %v72_v8, %v314_v21  ;;  %v117_v22 = vmax.f32 %v312_v20, %v314_v21  ;;  %vm154_vm7 = vcmp.gt.f32.partialorder %v314_v21, %v312_v20 }
 0x106   :  { %v85_v23 = vsel %vm83_vm4, %v81_v13, 128  ;;  %v170_v9 = vld [vmem:[#allocation2] sm:$0xff] }
 0x107   :  { %v121_v24 = vsub.f32 %v312_v20, %v117_v22  ;;  %166 = vst.msk [vmem:[#allocation2 + $0x8] sm:$0xff] %vm22_vm1, %v117_v22  ;;  %135 = vperm.xlu1 %233, %v117_v22   ;;  %v101_v25 = vshra.s32 %v85_v23, 16  ;;  %v100_v39 = vand.u32 65535, %v85_v23 }
 0x109   :  { %v103_v26 = vcvt.s32.f32 %v101_v25  ;;  %v102_v40 = vcvt.s32.f32 %v100_v39  ;;  %v124_v45 = vmul.f32 1.442695, %v121_v24 }
 0x10b   :  { %104 = vmin.xlane.f32.xlu2 %v103_v26 }
 0x10e   :  { %v171_v13 = vld [vmem:[#allocation2 + $0x8] sm:$0xff] }
 0x171   :  { %v131_v27 = vpop.permute.xlu1 %130 }
 0x172   :  { %v138_v28 = vsub.f32 %v70_v6, %v131_v27 }
 0x174   :  { %v140_v30 = vmul.f32 1.442695, %v138_v28 }
 0x176   :  { %237 = vpow2.f32 %v140_v30  ;;  %v91_v31 = vpop.xlane.xlu2 %90 }
 0x177   :  { %vm92_vm5 = vcmp.eq.f32.partialorder %v89_v19, %v91_v31  ;;  %v97_v44 = vcvt.f32.s32 %v91_v31 }
 0x178   :  { %v93_v33 = vsel %vm92_vm5, %v88_v32, inf }
 0x179   :  { %v136_v34 = vpop.permute.xlu1 %135  ;;  %94 = vmin.xlane.f32.xlu2 %v93_v33  ;;  %v98_v49 = vshll.u32 %v97_v44, 16 }
 0x17a   :  { %v139_v35 = vsub.f32 %v72_v8, %v136_v34 }
 0x17c   :  { %v238_v36 = vpop.eup %237  ;;  %v142_v37 = vmul.f32 1.442695, %v139_v35 }
 0x17d   :  { %144 = vadd.xlane.f32.xlu0 %v238_v36 }
 0x17e   :  { %239 = vpow2.f32 %v142_v37  ;;  %v105_v38 = vpop.xlane.xlu2 %104 }
 0x17f   :  { %vm106_vm6 = vcmp.eq.f32.partialorder %v103_v26, %v105_v38  ;;  %241 = vpow2.f32 %v122_v43  ;;  %v111_v59 = vcvt.f32.s32 %v105_v38 }
 0x180   :  { %v107_v42 = vsel %vm106_vm6, %v102_v40, inf  ;;  %243 = vpow2.f32 %v124_v45 }
 0x181   :  { %v112_v63 = vshll.u32 %v111_v59, 16 }
 0x184   :  { %v240_v41 = vpop.eup %239 }
 0x185   :  { %146 = vadd.xlane.f32.xlu1 %v240_v41  ;;  %108 = vmin.xlane.f32.xlu0 %v107_v42  ;;  %v242_v46 = vpop.eup %241 }
 0x186   :  { %v126_v53 = vmul.f32 %v242_v46, %v118_v48  ;;  %v244_v57 = vpop.eup %243 }
 0x187   :  { %v127_v60 = vmul.f32 %v244_v57, %v119_v58 }
 0x1ec   :  { %v95_v47 = vpop.xlane.xlu2 %94 }
 0x1ed   :  { %v96_v50 = vcvt.f32.s32 %v95_v47 }
 0x1ef   :  { %v99_v52 = vadd.s32 %v98_v49, %v96_v50 }
 0x1f0   :  { %v145_v54 = vpop.xlane.xlu0 %144 }
 0x1f1   :  { %v161_v55 = vsel %vm153_vm3, %v99_v52, %v159_v51  ;;  %v148_v56 = vadd.f32 %v145_v54, %v126_v53 }
 0x1f2   :  { %163 = vst.msk [vmem:[#allocation4] sm:$0xff] %vm22_vm1, %v161_v55 }
 0x1f3   :  { %151 = vst.msk [vmem:[#allocation3] sm:$0xff] %vm22_vm1, %v148_v56 }
 0x1f8   :  { %v147_v61 = vpop.xlane.xlu1 %146  ;;  %v109_v62 = vpop.xlane.xlu0 %108 }
 0x1f9   :  { %v149_v0 = vadd.f32 %v147_v61, %v127_v60  ;;  %v110_v1 = vcvt.f32.s32 %v109_v62  ;;  %v192_v15 = vld [vmem:[#allocation4] sm:$0xff] }
 0x1fa   :  { %v172_v3 = vld [vmem:[#allocation3] sm:$0xff] }
 0x1fb   :  { %152 = vst.msk [vmem:[#allocation3 + $0x8] sm:$0xff] %vm22_vm1, %v149_v0  ;;  %v113_v4 = vadd.s32 %v112_v63, %v110_v1  ;;  %245 = vlog2.f32 %v172_v3 }
 0x1fd   :  { %v162_v5 = vsel %vm154_vm7, %v113_v4, %v160_v2 }
 0x1fe   :  { %164 = vst.msk [vmem:[#allocation4 + $0x8] sm:$0xff] %vm22_vm1, %v162_v5 }
 0x201   :  { %v246_v6 = vpop.eup %245 }
 0x202   :  { %v175_v7 = vmul.f32 0.6931472, %v246_v6  ;;  %v173_v8 = vld [vmem:[#allocation3 + $0x8] sm:$0xff] }
 0x203   :  { %247 = vlog2.f32 %v173_v8 }
 0x204   :  { %v178_v10 = vadd.f32 %v175_v7, %v170_v9 }
 0x205   :  { %v193_v16 = vld [vmem:[#allocation4 + $0x8] sm:$0xff] }
 0x206   :  { %182 = vperm.xlu2 %234, %v178_v10  }
 0x209   :  { %v248_v11 = vpop.eup %247 }
 0x20a   :  { %v177_v12 = vmul.f32 0.6931472, %v248_v11 }
 0x20c   :  { %v179_v14 = vadd.f32 %v177_v12, %v171_v13 }
 0x20e   :  { %187 = vperm.xlu0 %235, %v179_v14   ;;  %195 = vperm.xlu2 %234, %v192_v15  }
 0x216   :  { %198 = vperm.xlu2 %234, %v193_v16  }
 0x260   :  { %v183_v17 = vpop.permute.xlu2 %182 }
 0x261   :  { %190 = vst [vmem:[%s345_s4] sm:$0xff] %v183_v17 }
 0x268   :  { %v196_v18 = vpop.permute.xlu2 %195 }
 0x269   :  { %200 = vst [vmem:[%s346_s5] sm:$0xff] %v196_v18 }
 0x270   :  { %v199_v19 = vpop.permute.xlu2 %198 }
 0x271   :  { %201 = vst [vmem:[%s346_s5 + $0x8] sm:$0xff] %v199_v19 }
 0x280   :  { %v188_v20 = vpop.permute.xlu0 %187 }
 0x281   :  { %191 = vst [vmem:[%s345_s4 + $0x8] sm:$0xff] %v188_v20 }

</bundles_post_ra>
